<compile_context>
chip_gen: v6e
topology: v6e:2x2x1
jax: 0.10.0
libtpu: 0.0.40
codegen_flags: <defaults>
</compile_context>

<pallas_src>
import functools

import numpy as np
import jax
import jax.numpy as jnp
from jax import lax
from jax.experimental import pallas as pl
from jax.experimental.pallas import tpu as pltpu


def _round_up(x, m):
    return (x + m - 1) // m * m


def _choose_batch_tiling(bs):
    """Pick (batch_tile, n_tiles).

    - multiples of 8 sublanes, padding < 8 rows per tile;
    - >= 2 tiles whenever bs >= 16 (feeds both TensorCores on v7x through the
      'parallel' grid axis; on single-TC v5e/v6e the extra tile only costs one
      more set of ~0.35us grid steps and the weights are not re-fetched);
    - tiles capped at 1024 rows: big tiles amortize per-grid-step overhead and
      MXU push/pop latency, and per-tile VMEM (~1-2 MiB) is far below even
      v7x's 64 MiB.
    """
    MAX_TILE_ROWS = 1024
    MIN_ROWS_TO_SPLIT = 16
    if bs < MIN_ROWS_TO_SPLIT:
        return _round_up(max(bs, 1), 8), 1
    n_tiles = max(2, -(-bs // MAX_TILE_ROWS))
    batch_tile = _round_up(-(-bs // n_tiles), 8)
    return batch_tile, n_tiles


# ----------------------------------------------------------------------------
# Fused Pallas kernel: all time intervals, state resident in VMEM.
# Grid = (batch_tiles, num_intervals); intervals iterate fastest (carry axis).
# ----------------------------------------------------------------------------
def _neural_ode_kernel(nsteps_ref,                       # SMEM scalar prefetch
                       z0_ref, w1_ref, w2_ref, b2_ref,   # inputs (VMEM)
                       out_ref,                          # output block (VMEM)
                       *scratch,                         # [z_scr] in seq mode
                       step_size, solver, final_only):
    i_t = pl.program_id(1)

    # final_only: the output block is the resident state (accumulator pattern,
    # written back to HBM only when the batch tile changes / at the end).
    state_ref = out_ref if final_only else scratch[0]

    # New batch tile (interval index restarts at 0): load the initial state.
    @pl.when(i_t == 0)
    def _():
        state_ref[...] = z0_ref[...]

    # Weights arrive in their compute dtype (bf16 pre-cast on the host when
    # use_bf16=True) -> no per-grid-step VPU converts here.
    w1 = w1_ref[...]
    w2 = w2_ref[...]
    cd = w1.dtype

    bt, dp = state_ref.shape
    # b2 broadcast hoisted out of the step loop (JAX does not CSE broadcasts).
    b2b = jnp.broadcast_to(b2_ref[...], (bt, dp))

    h = jnp.float32(step_size)
    h_half = jnp.float32(0.5 * step_size)
    h_sixth = jnp.float32(step_size / 6.0)

    def f(z):
        # b1 is folded into W1 via the constant-1 state column (see wrapper).
        a = jnp.tanh(jnp.dot(z.astype(cd), w1,
                             preferred_element_type=jnp.float32))
        return jnp.dot(a.astype(cd), w2,
                       preferred_element_type=jnp.float32) + b2b

    def step(_, z):
        if solver == "Euler":
            return z + h * f(z)
        # RK4 with incremental accumulation: ~3 live (bt, dp) f32 temporaries
        # instead of ~6, no separate h-scaled k1..k4 arrays.
        f1 = f(z)
        f2 = f(z + h_half * f1)
        acc = f1 + 2.0 * f2
        f3 = f(z + h_half * f2)
        acc = acc + 2.0 * f3
        f4 = f(z + h * f3)
        acc = acc + f4
        return z + h_sixth * acc

    n = nsteps_ref[i_t]                       # per-interval dynamic trip count
    z = lax.fori_loop(0, n, step, state_ref[...])
    state_ref[...] = z
    if not final_only:
        out_ref[...] = z                      # per-interval snapshot (seq mode)


def _ode_forward_call(z0_pad, w1_p, w2_p, b2_p, n_steps, step_size, solver,
                      batch_tile, return_whole_sequence):
    """One fused pallas_call over all intervals.

    Returns (B_pad, D_pad) when only the final state is needed, or
    (T, B_pad, D_pad) when the whole sequence is requested.
    """
    B, D = z0_pad.shape
    T = int(n_steps.shape[0])
    final_only = not return_whole_sequence

    kernel = functools.partial(_neural_ode_kernel, step_size=step_size,
                               solver=solver, final_only=final_only)

    in_specs = [
        pl.BlockSpec((batch_tile, D), lambda b, i, n: (b, 0)),
        pl.BlockSpec(w1_p.shape, lambda b, i, n: (0, 0)),
        pl.BlockSpec(w2_p.shape, lambda b, i, n: (0, 0)),
        pl.BlockSpec(b2_p.shape, lambda b, i, n: (0, 0)),
    ]

    if final_only:
        # Accumulator output: index map independent of the interval axis ->
        # the block stays VMEM-resident across "arbitrary" and is written back
        # to HBM once per batch tile.
        out_shape = jax.ShapeDtypeStruct((B, D), jnp.float32)
        out_specs = pl.BlockSpec((batch_tile, D), lambda b, i, n: (b, 0))
        scratch_shapes = []
    else:
        out_shape = jax.ShapeDtypeStruct((T, B, D), jnp.float32)
        out_specs = pl.BlockSpec((None, batch_tile, D),
                                 lambda b, i, n: (i, b, 0))
        scratch_shapes = [pltpu.VMEM((batch_tile, D), jnp.float32)]

    return pl.pallas_call(
        kernel,
        out_shape=out_shape,
        grid_spec=pltpu.PrefetchScalarGridSpec(
            num_scalar_prefetch=1,
            grid=(B // batch_tile, T),
            in_specs=in_specs,
            out_specs=out_specs,
            scratch_shapes=scratch_shapes,
        ),
        compiler_params=pltpu.CompilerParams(
            dimension_semantics=("parallel", "arbitrary")),
    )(n_steps, z0_pad, w1_p, w2_p, b2_p)


# ----------------------------------------------------------------------------
# NeuralODE.forward equivalent (padding + single fused kernel call)
# ----------------------------------------------------------------------------
def neural_ode_forward(z0, params, t=None, ode_solve="RK", step_size=0.1,
                       return_whole_sequence=False, use_bf16=True):
    """Mirrors ODEAdjoint.forward + NeuralODE.forward (default t = [0., 1.])."""
    if t is None:
        t = np.array([0.0, 1.0], dtype=np.float32)
    t = np.asarray(t, dtype=np.float32)

    w1, b1, w2, b2 = params
    bs, dim = z0.shape
    hidden = w1.shape[1]

    num_intervals = int(t.shape[0]) - 1
    if num_intervals <= 0:
        return jnp.asarray(z0)[None] if return_whole_sequence else jnp.asarray(z0)

    # Lane-dense padding: last dims -> multiple of 128 lanes, batch tiled in
    # multiples of 8 sublanes.  One extra D column is reserved for a constant-1
    # "bias lane": its time-derivative is exactly 0 (W2/b2 padded columns are
    # zero), so folding b1 into W1 through it is exact for Euler and RK4.
    D_pad = _round_up(dim + 1, 128)
    H_pad = _round_up(hidden, 128)
    batch_tile, n_tiles = _choose_batch_tiling(bs)
    B_pad = batch_tile * n_tiles

    z0_p = jnp.zeros((B_pad, D_pad), jnp.float32)
    z0_p = z0_p.at[:bs, :dim].set(jnp.asarray(z0, jnp.float32))
    z0_p = z0_p.at[:, dim].set(1.0)                      # constant-1 bias lane

    w1_p = jnp.zeros((D_pad, H_pad), jnp.float32)
    w1_p = w1_p.at[:dim, :hidden].set(w1)
    w1_p = w1_p.at[dim, :hidden].set(jnp.reshape(b1, (-1,)))   # fold b1 into W1
    w2_p = jnp.zeros((H_pad, D_pad), jnp.float32).at[:hidden, :dim].set(w2)
    b2_p = jnp.zeros((1, D_pad), jnp.float32).at[:, :dim].set(
        jnp.reshape(b2, (1, -1)))

    if use_bf16:
        # Pre-cast MXU operands on the host: no in-kernel converts, half the
        # weight VMEM/DMA.  Accumulation stays f32 inside the kernel.
        w1_p = w1_p.astype(jnp.bfloat16)
        w2_p = w2_p.astype(jnp.bfloat16)

    # n_steps per interval: int(|t_{i+1} - t_i|), exactly as in the reference.
    # (Semantic quirk inherited from the PyTorch module: integrates over
    #  n_steps*step_size, not the actual interval length; |dt| < 1 -> identity.)
    n_steps = jnp.asarray(np.abs(t[1:] - t[:-1]).astype(np.int32))

    out = _ode_forward_call(z0_p, w1_p, w2_p, b2_p, n_steps, step_size,
                            ode_solve, batch_tile, return_whole_sequence)

    if return_whole_sequence:
        full = jnp.concatenate([z0_p[None], out], axis=0)   # z[0] = z0
        return full[:, :bs, :dim]
    return out[:bs, :dim]


# ----------------------------------------------------------------------------
# Pure-JAX reference (for correctness check)
# ----------------------------------------------------------------------------
def _reference_forward(z0, params, t, ode_solve, step_size, use_bf16=False,
                       return_whole_sequence=False):
    w1, b1, w2, b2 = params
    cd = jnp.bfloat16 if use_bf16 else jnp.float32
    prec = jax.lax.Precision.HIGHEST
    w1c = w1.astype(cd)
    w2c = w2.astype(cd)
    # The kernel folds b1 into W1, so on the bf16 path the bias is also bf16.
    b1c = b1.astype(cd).astype(jnp.float32)

    def f(z):
        a = jnp.tanh(jnp.dot(z.astype(cd), w1c, precision=prec,
                             preferred_element_type=jnp.float32) + b1c)
        return jnp.dot(a.astype(cd), w2c, precision=prec,
                       preferred_element_type=jnp.float32) + b2

    t = np.asarray(t, dtype=np.float32)
    h = np.float32(step_size)
    z = z0
    zs = [z0]
    for i_t in range(t.shape[0] - 1):
        n = int(abs(float(t[i_t + 1] - t[i_t])))
        for _ in range(n):
            if ode_solve == "Euler":
                z = z + h * f(z)
            else:
                k1 = h * f(z)
                k2 = h * f(z + 0.5 * k1)
                k3 = h * f(z + 0.5 * k2)
                k4 = h * f(z + k3)
                z = z + (1.0 / 6.0) * (k1 + 2.0 * k2 + 2.0 * k3 + k4)
        zs.append(z)
    if return_whole_sequence:
        return jnp.stack(zs, axis=0)
    return z


if __name__ == "__main__":
    key = jax.random.PRNGKey(0)
    bs, dim, hidden = 8, 16, 32

    k1, k2, k3, k4, k5 = jax.random.split(key, 5)
    z0 = jax.random.normal(k1, (bs, dim), dtype=jnp.float32)
    w1 = 0.1 * jax.random.normal(k2, (dim, hidden), dtype=jnp.float32)
    b1 = 0.1 * jax.random.normal(k3, (1, hidden), dtype=jnp.float32)
    w2 = 0.1 * jax.random.normal(k4, (hidden, dim), dtype=jnp.float32)
    b2 = 0.1 * jax.random.normal(k5, (1, dim), dtype=jnp.float32)
    params = (w1, b1, w2, b2)

    STEP_SIZE = 0.25

    # Tolerances are loose enough to absorb MXU multi-pass vs XLA default
    # matmul-precision differences, tight enough to catch semantic bugs
    # (wrong step counts / solver / bias handling are O(1e-2) or larger).

    # 1) Default time grid [0, 1], RK4, f32, final state (accumulator output).
    t = np.array([0.0, 1.0], dtype=np.float32)
    out = jax.block_until_ready(
        neural_ode_forward(z0, params, t=t, ode_solve="RK",
                           step_size=STEP_SIZE, use_bf16=False))
    ref = _reference_forward(z0, params, t, "RK", STEP_SIZE, use_bf16=False)
    assert out.shape == (bs, dim)
    np.testing.assert_allclose(np.asarray(out), np.asarray(ref),
                               atol=1e-3, rtol=1e-3)

    # 2) Multi-interval t, whole sequence, bf16 MXU operands (one fused call).
    t_multi = np.array([0.0, 1.0, 3.0, 6.0], dtype=np.float32)
    seq = jax.block_until_ready(
        neural_ode_forward(z0, params, t=t_multi, ode_solve="RK",
                           step_size=STEP_SIZE, return_whole_sequence=True,
                           use_bf16=True))
    seq_ref = _reference_forward(z0, params, t_multi, "RK", STEP_SIZE,
                                 use_bf16=True, return_whole_sequence=True)
    assert seq.shape == (t_multi.shape[0], bs, dim)
    np.testing.assert_allclose(np.asarray(seq), np.asarray(seq_ref),
                               atol=3e-3, rtol=3e-3)

    # 3) Euler path, multi-interval, f32, final state only.
    out_e = jax.block_until_ready(
        neural_ode_forward(z0, params, t=t_multi, ode_solve="Euler",
                           step_size=STEP_SIZE, use_bf16=False))
    ref_e = _reference_forward(z0, params, t_multi, "Euler", STEP_SIZE,
                               use_bf16=False)
    np.testing.assert_allclose(np.asarray(out_e), np.asarray(ref_e),
                               atol=1e-3, rtol=1e-3)

    print("KERNEL_OK")
</pallas_src>

<mosaic_0001>
module attributes {stable_mosaic.version = 11 : i64} {
  func.func @_neural_ode_kernel(%arg0: i32, %arg1: i32, %arg2: memref<1xi32, #tpu.memory_space<smem>>, %arg3: memref<8x128xf32, #tpu.memory_space<vmem>>, %arg4: memref<128x128xf32, #tpu.memory_space<vmem>>, %arg5: memref<128x128xf32, #tpu.memory_space<vmem>>, %arg6: memref<1x128xf32, #tpu.memory_space<vmem>>, %arg7: memref<8x128xf32, #tpu.memory_space<vmem>>) attributes {dimension_semantics = [#tpu.dimension_semantics<parallel>, #tpu.dimension_semantics<arbitrary>], iteration_bounds = array<i64: 1, 1>, scalar_prefetch = 1 : i64, scratch_operands = 0 : i64, tpu.core_type = #tpu.core_type<tc>, window_params = [{transform_indices = @transform_0, window_bounds = array<i64: 8, 128>}, {pipeline_mode = #tpu.pipeline_mode<synchronous>, transform_indices = @transform_1, window_bounds = array<i64: 128, 128>}, {pipeline_mode = #tpu.pipeline_mode<synchronous>, transform_indices = @transform_2, window_bounds = array<i64: 128, 128>}, {pipeline_mode = #tpu.pipeline_mode<synchronous>, transform_indices = @transform_3, window_bounds = array<i64: 1, 128>}, {transform_indices = @transform_4, window_bounds = array<i64: 8, 128>}]} {
    %c0_i32 = arith.constant 0 : i32
    %0 = arith.cmpi eq, %arg1, %c0_i32 : i32
    %1 = arith.extui %0 : i1 to i32
    %c0_i32_0 = arith.constant 0 : i32
    %2 = arith.cmpi ne, %1, %c0_i32_0 : i32
    scf.if %2 {
      %c0_13 = arith.constant 0 : index
      %c0_14 = arith.constant 0 : index
      %15 = vector.load %arg3[%c0_13, %c0_14] : memref<8x128xf32, #tpu.memory_space<vmem>>, vector<8x128xf32>
      %c0_15 = arith.constant 0 : index
      %c0_16 = arith.constant 0 : index
      %16 = vector.load %arg7[%c0_15, %c0_16] : memref<8x128xf32, #tpu.memory_space<vmem>>, vector<8x128xf32>
      tpu.vector_store %arg7[%c0_15, %c0_16], %15 {strides = array<i32>} : memref<8x128xf32, #tpu.memory_space<vmem>>, vector<8x128xf32>,
    } else {
    }
    %c0 = arith.constant 0 : index
    %c0_1 = arith.constant 0 : index
    %3 = vector.load %arg4[%c0, %c0_1] : memref<128x128xf32, #tpu.memory_space<vmem>>, vector<128x128xf32>
    %c0_2 = arith.constant 0 : index
    %c0_3 = arith.constant 0 : index
    %4 = vector.load %arg5[%c0_2, %c0_3] : memref<128x128xf32, #tpu.memory_space<vmem>>, vector<128x128xf32>
    %c0_4 = arith.constant 0 : index
    %c0_5 = arith.constant 0 : index
    %5 = vector.load %arg6[%c0_4, %c0_5] : memref<1x128xf32, #tpu.memory_space<vmem>>, vector<1x128xf32>
    %6 = vector.shape_cast %5 : vector<1x128xf32> to vector<1x128xf32>
    %7 = vector.broadcast %6 : vector<1x128xf32> to vector<8x128xf32>
    %8 = arith.index_cast %arg1 : i32 to index
    %9 = memref.load %arg2[%8] : memref<1xi32, #tpu.memory_space<smem>>
    %c0_6 = arith.constant 0 : index
    %c0_7 = arith.constant 0 : index
    %10 = vector.load %arg7[%c0_6, %c0_7] : memref<8x128xf32, #tpu.memory_space<vmem>>, vector<8x128xf32>
    %cst = arith.constant 1.250000e-01 : f32
    %cst_8 = arith.constant 2.500000e-01 : f32
    %cst_9 = arith.constant 0.0416666679 : f32
    %c0_i32_10 = arith.constant 0 : i32
    %11 = arith.subi %9, %c0_i32_10 : i32
    %12 = arith.addi %c0_i32_10, %11 : i32
    %c1_i32 = arith.constant 1 : i32
    %13 = scf.for %arg8 = %c0_i32_10 to %12 step %c1_i32 iter_args(%arg9 = %10) -> (vector<8x128xf32>)  : i32 {
      %cst_13 = arith.constant dense<0.000000e+00> : vector<8x128xf32>
      %15 = tpu.matmul %arg9, %3, %cst_13 {dimension_numbers = #tpu.dot_dimension_numbers<[1], [0], [0], [1], [0, 0, 1, 1], [], []>} : vector<8x128xf32>, vector<128x128xf32>, vector<8x128xf32> -> vector<8x128xf32>
      %16 = math.tanh %15 : vector<8x128xf32>
      %cst_14 = arith.constant dense<0.000000e+00> : vector<8x128xf32>
      %17 = tpu.matmul %16, %4, %cst_14 {dimension_numbers = #tpu.dot_dimension_numbers<[1], [0], [0], [1], [0, 0, 1, 1], [], []>} : vector<8x128xf32>, vector<128x128xf32>, vector<8x128xf32> -> vector<8x128xf32>
      %18 = arith.addf %17, %7 : vector<8x128xf32>
      %19 = vector.broadcast %cst : f32 to vector<8x128xf32>
      %20 = arith.mulf %19, %18 : vector<8x128xf32>
      %21 = arith.addf %arg9, %20 : vector<8x128xf32>
      %cst_15 = arith.constant dense<0.000000e+00> : vector<8x128xf32>
      %22 = tpu.matmul %21, %3, %cst_15 {dimension_numbers = #tpu.dot_dimension_numbers<[1], [0], [0], [1], [0, 0, 1, 1], [], []>} : vector<8x128xf32>, vector<128x128xf32>, vector<8x128xf32> -> vector<8x128xf32>
      %23 = math.tanh %22 : vector<8x128xf32>
      %cst_16 = arith.constant dense<0.000000e+00> : vector<8x128xf32>
      %24 = tpu.matmul %23, %4, %cst_16 {dimension_numbers = #tpu.dot_dimension_numbers<[1], [0], [0], [1], [0, 0, 1, 1], [], []>} : vector<8x128xf32>, vector<128x128xf32>, vector<8x128xf32> -> vector<8x128xf32>
      %25 = arith.addf %24, %7 : vector<8x128xf32>
      %cst_17 = arith.constant 2.000000e+00 : f32
      %26 = vector.broadcast %cst_17 : f32 to vector<8x128xf32>
      %27 = arith.mulf %26, %25 : vector<8x128xf32>
      %28 = arith.addf %18, %27 : vector<8x128xf32>
      %29 = vector.broadcast %cst : f32 to vector<8x128xf32>
      %30 = arith.mulf %29, %25 : vector<8x128xf32>
      %31 = arith.addf %arg9, %30 : vector<8x128xf32>
      %cst_18 = arith.constant dense<0.000000e+00> : vector<8x128xf32>
      %32 = tpu.matmul %31, %3, %cst_18 {dimension_numbers = #tpu.dot_dimension_numbers<[1], [0], [0], [1], [0, 0, 1, 1], [], []>} : vector<8x128xf32>, vector<128x128xf32>, vector<8x128xf32> -> vector<8x128xf32>
      %33 = math.tanh %32 : vector<8x128xf32>
      %cst_19 = arith.constant dense<0.000000e+00> : vector<8x128xf32>
      %34 = tpu.matmul %33, %4, %cst_19 {dimension_numbers = #tpu.dot_dimension_numbers<[1], [0], [0], [1], [0, 0, 1, 1], [], []>} : vector<8x128xf32>, vector<128x128xf32>, vector<8x128xf32> -> vector<8x128xf32>
      %35 = arith.addf %34, %7 : vector<8x128xf32>
      %cst_20 = arith.constant 2.000000e+00 : f32
      %36 = vector.broadcast %cst_20 : f32 to vector<8x128xf32>
      %37 = arith.mulf %36, %35 : vector<8x128xf32>
      %38 = arith.addf %28, %37 : vector<8x128xf32>
      %39 = vector.broadcast %cst_8 : f32 to vector<8x128xf32>
      %40 = arith.mulf %39, %35 : vector<8x128xf32>
      %41 = arith.addf %arg9, %40 : vector<8x128xf32>
      %cst_21 = arith.constant dense<0.000000e+00> : vector<8x128xf32>
      %42 = tpu.matmul %41, %3, %cst_21 {dimension_numbers = #tpu.dot_dimension_numbers<[1], [0], [0], [1], [0, 0, 1, 1], [], []>} : vector<8x128xf32>, vector<128x128xf32>, vector<8x128xf32> -> vector<8x128xf32>
      %43 = math.tanh %42 : vector<8x128xf32>
      %cst_22 = arith.constant dense<0.000000e+00> : vector<8x128xf32>
      %44 = tpu.matmul %43, %4, %cst_22 {dimension_numbers = #tpu.dot_dimension_numbers<[1], [0], [0], [1], [0, 0, 1, 1], [], []>} : vector<8x128xf32>, vector<128x128xf32>, vector<8x128xf32> -> vector<8x128xf32>
      %45 = arith.addf %44, %7 : vector<8x128xf32>
      %46 = arith.addf %38, %45 : vector<8x128xf32>
      %47 = vector.broadcast %cst_9 : f32 to vector<8x128xf32>
      %48 = arith.mulf %47, %46 : vector<8x128xf32>
      %49 = arith.addf %arg9, %48 : vector<8x128xf32>
      scf.yield %49 : vector<8x128xf32>
    }
    %c0_11 = arith.constant 0 : index
    %c0_12 = arith.constant 0 : index
    %14 = vector.load %arg7[%c0_11, %c0_12] : memref<8x128xf32, #tpu.memory_space<vmem>>, vector<8x128xf32>
    tpu.vector_store %arg7[%c0_11, %c0_12], %13 {strides = array<i32>} : memref<8x128xf32, #tpu.memory_space<vmem>>, vector<8x128xf32>,
    return
  }
  func.func @transform_0(%arg0: i32, %arg1: i32, %arg2: memref<1xi32, #tpu.memory_space<smem>>) -> (i32, i32) {
    %c0_i32 = arith.constant 0 : i32
    %c0_i32_0 = arith.constant 0 : i32
    return %arg0, %c0_i32 : i32, i32
  }
  func.func @transform_1(%arg0: i32, %arg1: i32, %arg2: memref<1xi32, #tpu.memory_space<smem>>) -> (i32, i32) {
    %c0_i32 = arith.constant 0 : i32
    %c0_i32_0 = arith.constant 0 : i32
    %c0_i32_1 = arith.constant 0 : i32
    return %c0_i32, %c0_i32_0 : i32, i32
  }
  func.func @transform_2(%arg0: i32, %arg1: i32, %arg2: memref<1xi32, #tpu.memory_space<smem>>) -> (i32, i32) {
    %c0_i32 = arith.constant 0 : i32
    %c0_i32_0 = arith.constant 0 : i32
    %c0_i32_1 = arith.constant 0 : i32
    return %c0_i32, %c0_i32_0 : i32, i32
  }
  func.func @transform_3(%arg0: i32, %arg1: i32, %arg2: memref<1xi32, #tpu.memory_space<smem>>) -> (i32, i32) {
    %c0_i32 = arith.constant 0 : i32
    %c0_i32_0 = arith.constant 0 : i32
    %c0_i32_1 = arith.constant 0 : i32
    return %c0_i32, %c0_i32_0 : i32, i32
  }
  func.func @transform_4(%arg0: i32, %arg1: i32, %arg2: memref<1xi32, #tpu.memory_space<smem>>) -> (i32, i32) {
    %c0_i32 = arith.constant 0 : i32
    %c0_i32_0 = arith.constant 0 : i32
    return %arg0, %c0_i32 : i32, i32
  }
}

</mosaic_0001>

<bundles_post_ra>
// kernel: tpu_custom_call.1
= control target key start
LH: loop header
LB: loop body
LE: loop exit
PB: predicated region body
PF: predicated region fallthrough
CT: control target
= control target key end

     0   :  { %11 = vsyncpa [#allocation5], 0  ;;  %s1717_s0 = inlined_call_operand.<no memory space> [shape: s32[1], index: 0, kind: input, shape index: {}]   ;;  %s1718_s1 = inlined_call_operand.hbm [shape: f32[8,128], index: 1, kind: input, shape index: {}]   ;;  %s1719_s2 = inlined_call_operand.hbm [shape: f32[128,128], index: 2, kind: input, shape index: {}]   ;;  %s1720_s3 = inlined_call_operand.hbm [shape: f32[128,128], index: 3, kind: input, shape index: {}]   ;;  %s1721_s4 = inlined_call_operand.vmem [shape: f32[1,128], index: 4, kind: input, shape index: {}]   ;;  %s1722_s5 = inlined_call_operand.hbm [shape: f32[8,128], index: 5, kind: output, shape index: {}]  }
   0x1   :  { %12 = vsyncpa [#allocation8], 0 }
   0x2   :  { %13 = vsyncpa [#allocation6], 0  ;;  %s1283_s18 = smov [#allocation7]  }
   0x3   :  { %s29_s19 = sshll.u32 %s1283_s18, 4  ;;  %s30_s19 = int_to_ptr.vmem [resolvable:$true] %s29_s19 }
   0x4   :  { %s1181_s20 = scalar_lea.vmem %s30_s19, 2048  ;;  %p1186_p1 = scmp.lt.s32.totalorder %s30_s19, %s30_s19 }
   0x5   :  { %p1182_p0 = scmp.ne.s32.totalorder %s30_s19, %s1181_s20  ;;  %p1187_p2 = scmp.lt.s32.totalorder %s1181_s20, %s1181_s20 }
   0x7   :  { %p1188_p3 = por %p1187_p2, %p1186_p1 }
   0x9   :  { %p1189_p4 = pnand %p1188_p3, %p1182_p0 }
   0xb   :  { %1192 = shalt.err (!%p1189_p4)
}
   0xc   :  { %s1284_s21 = smov 128   ;;  %s1285_s22 = smov 8  }
   0xd   :  { %35 = dma.hbm_to_vmem [thread:$0]  %s1719_s2, 2048, %s30_s19, [#allocation8], %s1284_s21, %s1284_s21, %s1285_s22  }
   0xe   :  { %s1286_s25 = smov [#allocation4]   ;;  %s1287_s27 = smov [#allocation9]  }
   0xf   :  { %s20_s26 = sshll.u32 %s1286_s25, 4  ;;  %s41_s28 = sshll.u32 %s1287_s27, 4  ;;  %s21_s26 = int_to_ptr.vmem [resolvable:$true] %s20_s26  ;;  %s42_s28 = int_to_ptr.vmem [resolvable:$true] %s41_s28 }
  0x10   :  { %s1201_s29 = scalar_lea.vmem %s21_s26, 128  ;;  %p1206_p6 = scmp.lt.s32.totalorder %s21_s26, %s21_s26 }
  0x11   :  { %p1202_p5 = scmp.ne.s32.totalorder %s21_s26, %s1201_s29  ;;  %p1207_p7 = scmp.lt.s32.totalorder %s1201_s29, %s1201_s29 }
  0x13   :  { %p1208_p8 = por %p1207_p7, %p1206_p6 }
  0x15   :  { %p1209_p9 = pnand %p1208_p8, %p1202_p5 }
  0x17   :  { %1212 = shalt.err (!%p1209_p9)
}
  0x18   :  { %23 = dma.hbm_to_vmem [thread:$0]  %s1718_s1, 128, %s21_s26, [#allocation5]  }
  0x19   :  { %s1221_s7 = scalar_lea.vmem %s42_s28, 2048  ;;  %p1226_p11 = scmp.lt.s32.totalorder %s42_s28, %s42_s28 }
  0x1a   :  { %p1222_p10 = scmp.ne.s32.totalorder %s42_s28, %s1221_s7  ;;  %p1227_p12 = scmp.lt.s32.totalorder %s1221_s7, %s1221_s7 }
  0x1c   :  { %p1228_p13 = por %p1227_p12, %p1226_p11 }
  0x1e   :  { %p1229_p0 = pnand %p1228_p13, %p1222_p10 }
  0x20   :  { %1232 = shalt.err (!%p1229_p0)
}
  0x21   :  { %47 = dma.hbm_to_vmem [thread:$0]  %s1720_s3, 2048, %s42_s28, [#allocation8], %s1284_s21, %s1284_s21, %s1285_s22  }
  0x22   :  { %1265 = dma.done.wait [#allocation5], 128  }
  0x23   :  { %1266 = vsyncadd [#allocation5], 4294967168 }
  0x24   :  { %1267 = dma.done.wait [#allocation8], 4096  }
  0x25   :  { %1268 = vsyncadd [#allocation8], 4294963200  ;;  %v1330_v0 = vld [vmem:[#allocation7] sm:$0xff]  ;;  %v1332_v1 = vld [vmem:[#allocation7 + $0x8] sm:$0xff]  ;;  %p716_p1 = scmp.le.s32.totalorder %s1717_s0, 0 }
  0x26   :  { %v1334_v2 = vld [vmem:[#allocation7 + $0x10] sm:$0xff]  ;;  %v1336_v3 = vld [vmem:[#allocation7 + $0x18] sm:$0xff]  ;;  %v1338_v4 = vld [vmem:[#allocation7 + $0x20] sm:$0xff]  ;;  %s1406_s11 = smov (!%p716_p1), 0  }
  0x27   :  { %v1340_v5 = vld [vmem:[#allocation7 + $0x28] sm:$0xff]  ;;  %v1342_v6 = vld [vmem:[#allocation7 + $0x30] sm:$0xff]  ;;  %v1344_v7 = vld [vmem:[#allocation7 + $0x38] sm:$0xff] }
  0x28   :  { %v1346_v8 = vld [vmem:[#allocation7 + $0x40] sm:$0xff]  ;;  %v1348_v9 = vld [vmem:[#allocation7 + $0x48] sm:$0xff]  ;;  %v1350_v10 = vld [vmem:[#allocation7 + $0x50] sm:$0xff] }
  0x29   :  { %v1352_v11 = vld [vmem:[#allocation7 + $0x58] sm:$0xff]  ;;  %v1354_v12 = vld [vmem:[#allocation7 + $0x60] sm:$0xff]  ;;  %v1356_v13 = vld [vmem:[#allocation7 + $0x68] sm:$0xff] }
  0x2a   :  { %v1358_v14 = vld [vmem:[#allocation7 + $0x70] sm:$0xff]  ;;  %v1360_v15 = vld [vmem:[#allocation7 + $0x78] sm:$0xff]  ;;  %v1362_v16 = vld [vmem:[#allocation9] sm:$0xff] }
  0x2b   :  { %v1364_v17 = vld [vmem:[#allocation9 + $0x8] sm:$0xff]  ;;  %v1366_v18 = vld [vmem:[#allocation9 + $0x10] sm:$0xff]  ;;  %v1368_v19 = vld [vmem:[#allocation9 + $0x18] sm:$0xff] }
  0x2c   :  { %v1370_v20 = vld [vmem:[#allocation9 + $0x20] sm:$0xff]  ;;  %v1372_v21 = vld [vmem:[#allocation9 + $0x28] sm:$0xff]  ;;  %v1374_v22 = vld [vmem:[#allocation9 + $0x30] sm:$0xff] }
  0x2d   :  { %v1376_v23 = vld [vmem:[#allocation9 + $0x38] sm:$0xff]  ;;  %v1378_v24 = vld [vmem:[#allocation9 + $0x40] sm:$0xff]  ;;  %v1380_v25 = vld [vmem:[#allocation9 + $0x48] sm:$0xff] }
  0x2e   :  { %v1382_v26 = vld [vmem:[#allocation9 + $0x50] sm:$0xff]  ;;  %v1384_v27 = vld [vmem:[#allocation9 + $0x58] sm:$0xff]  ;;  %v1386_v28 = vld [vmem:[#allocation9 + $0x60] sm:$0xff]  ;;  %710 = sbr.rel (%p716_p1) target bundleno = 1711 (0x6af), region = 53 }
  0x2f   :  { %v1388_v29 = vld [vmem:[#allocation9 + $0x68] sm:$0xff]  ;;  %v1390_v30 = vld [vmem:[#allocation9 + $0x70] sm:$0xff]  ;;  %v1392_v31 = vld [vmem:[#allocation9 + $0x78] sm:$0xff] }
  0x30   :  { %v1397_v32 = vld [vmem:[%s1721_s4] ss:$0 sm:$0xff] }
  0x31   :  { %v63_v33 = vld [vmem:[#allocation4] sm:$0xff]  }
  0x32   :  { %64 = vst [vmem:[#allocation10] sm:$0xff] %v63_v33  ;;  %v1723_v34 = vmov %v63_v33 }
  0x33 LB: > { %v1288_v35 = vmov 0.0   ;;  %vm1289_vm0 = vmmov 0   ;;  %s109_s11 = sadd.s32 1, %s1277_s11   ;;  %s1277_s11 = sphi %s1406_s11, %s109_s11   ;;  %v1273_v33 = vphi %v63_v33, %v1724_v33  }
  0x34   : > { %853 = vmatprep.subr.mxu0 %v1288_v35  ;;  %885 = vmatprep.mubr.msk.f32.mxu0 %vm1289_vm0, %v1288_v35  ;;  %p108_p2 = scmp.ge.s32.totalorder %s109_s11, %s1717_s0 }
  0x35   : > { %854 = vmatpush3.msra.mxu0 %v1360_v15  ;;  %888 = vmatprep.subr.mxu1 %v1288_v35 }
  0x36   : > { %855 = vmatprep.subr.mxu0 %v1288_v35  ;;  %889 = vmatpush3.msra.mxu1 %v1392_v31 }
  0x37   : > { %856 = vmatpush3.msra.mxu0 %v1358_v14  ;;  %890 = vmatprep.subr.mxu1 %v1288_v35 }
  0x38   : > { %857 = vmatprep.subr.mxu0 %v1288_v35  ;;  %891 = vmatpush3.msra.mxu1 %v1390_v30 }
  0x39   : > { %858 = vmatpush3.msra.mxu0 %v1356_v13  ;;  %892 = vmatprep.subr.mxu1 %v1288_v35 }
  0x3a   : > { %859 = vmatprep.subr.mxu0 %v1288_v35  ;;  %893 = vmatpush3.msra.mxu1 %v1388_v29 }
  0x3b   : > { %860 = vmatpush3.msra.mxu0 %v1354_v12  ;;  %894 = vmatprep.subr.mxu1 %v1288_v35 }
  0x3c   : > { %861 = vmatprep.subr.mxu0 %v1288_v35  ;;  %895 = vmatpush3.msra.mxu1 %v1386_v28 }
  0x3d   : > { %862 = vmatpush3.msra.mxu0 %v1352_v11  ;;  %896 = vmatprep.subr.mxu1 %v1288_v35 }
  0x3e   : > { %863 = vmatprep.subr.mxu0 %v1288_v35  ;;  %897 = vmatpush3.msra.mxu1 %v1384_v27 }
  0x3f   : > { %864 = vmatpush3.msra.mxu0 %v1350_v10  ;;  %898 = vmatprep.subr.mxu1 %v1288_v35 }
  0x40   : > { %865 = vmatprep.subr.mxu0 %v1288_v35  ;;  %899 = vmatpush3.msra.mxu1 %v1382_v26 }
  0x41   : > { %866 = vmatpush3.msra.mxu0 %v1348_v9  ;;  %900 = vmatprep.subr.mxu1 %v1288_v35 }
  0x42   : > { %867 = vmatprep.subr.mxu0 %v1288_v35  ;;  %901 = vmatpush3.msra.mxu1 %v1380_v25 }
  0x43   : > { %868 = vmatpush3.msra.mxu0 %v1346_v8  ;;  %902 = vmatprep.subr.mxu1 %v1288_v35 }
  0x44   : > { %869 = vmatprep.subr.mxu0 %v1288_v35  ;;  %903 = vmatpush3.msra.mxu1 %v1378_v24 }
  0x45   : > { %870 = vmatpush3.msra.mxu0 %v1344_v7  ;;  %904 = vmatprep.subr.mxu1 %v1288_v35 }
  0x46   : > { %871 = vmatprep.subr.mxu0 %v1288_v35  ;;  %905 = vmatpush3.msra.mxu1 %v1376_v23 }
  0x47   : > { %872 = vmatpush3.msra.mxu0 %v1342_v6  ;;  %906 = vmatprep.subr.mxu1 %v1288_v35 }
  0x48   : > { %873 = vmatprep.subr.mxu0 %v1288_v35  ;;  %907 = vmatpush3.msra.mxu1 %v1374_v22 }
  0x49   : > { %874 = vmatpush3.msra.mxu0 %v1340_v5  ;;  %908 = vmatprep.subr.mxu1 %v1288_v35 }
  0x4a   : > { %875 = vmatprep.subr.mxu0 %v1288_v35  ;;  %909 = vmatpush3.msra.mxu1 %v1372_v21 }
  0x4b   : > { %876 = vmatpush3.msra.mxu0 %v1338_v4  ;;  %910 = vmatprep.subr.mxu1 %v1288_v35 }
  0x4c   : > { %877 = vmatprep.subr.mxu0 %v1288_v35  ;;  %911 = vmatpush3.msra.mxu1 %v1370_v20 }
  0x4d   : > { %878 = vmatpush3.msra.mxu0 %v1336_v3  ;;  %912 = vmatprep.subr.mxu1 %v1288_v35 }
  0x4e   : > { %879 = vmatprep.subr.mxu0 %v1288_v35  ;;  %913 = vmatpush3.msra.mxu1 %v1368_v19 }
  0x4f   : > { %880 = vmatpush3.msra.mxu0 %v1334_v2  ;;  %914 = vmatprep.subr.mxu1 %v1288_v35 }
  0x50   : > { %881 = vmatprep.subr.mxu0 %v1288_v35  ;;  %915 = vmatpush3.msra.mxu1 %v1366_v18 }
  0x51   : > { %882 = vmatpush3.msra.mxu0 %v1332_v1  ;;  %916 = vmatprep.subr.mxu1 %v1288_v35 }
  0x52   : > { %883 = vmatprep.subr.mxu0 %v1288_v35  ;;  %917 = vmatpush3.msra.mxu1 %v1364_v17 }
  0x53   : > { %884 = vmatpush3.msra.mxu0 %v1330_v0  ;;  %918 = vmatprep.subr.mxu1 %v1288_v35 }
  0x54   : > { %886 = vmatmul.mubr.f32.vlgmr.msra.gmra.mxu0 %v1273_v33  ;;  %919 = vmatpush3.msra.mxu1 %v1362_v16 }
  0x55   : > { %920 = vmatprep.mubr.msk.f32.mxu1 %vm1289_vm0, %v1288_v35  ;;  %923 = vmatprep.subr.mxu0 %v1288_v35 }
  0x56   : > { %924 = vmatpush3.msra.mxu0 %v1360_v15  ;;  %955 = vmatprep.mubr.msk.f32.mxu0 %vm1289_vm0, %v1288_v35 }
  0x57   : > { %925 = vmatprep.subr.mxu0 %v1288_v35  ;;  %958 = vmatprep.subr.mxu1 %v1288_v35 }
  0x58   : > { %926 = vmatpush3.msra.mxu0 %v1358_v14 }
  0x59   : > { %927 = vmatprep.subr.mxu0 %v1288_v35 }
  0x5a   : > { %928 = vmatpush3.msra.mxu0 %v1356_v13 }
  0x5b   : > { %929 = vmatprep.subr.mxu0 %v1288_v35 }
  0x5c   : > { %930 = vmatpush3.msra.mxu0 %v1354_v12 }
  0x5d   : > { %931 = vmatprep.subr.mxu0 %v1288_v35 }
  0x5e   : > { %932 = vmatpush3.msra.mxu0 %v1352_v11 }
  0x5f   : > { %933 = vmatprep.subr.mxu0 %v1288_v35 }
  0x60   : > { %934 = vmatpush3.msra.mxu0 %v1350_v10 }
  0x61   : > { %935 = vmatprep.subr.mxu0 %v1288_v35 }
  0x62   : > { %936 = vmatpush3.msra.mxu0 %v1348_v9 }
  0x63   : > { %937 = vmatprep.subr.mxu0 %v1288_v35 }
  0x64   : > { %938 = vmatpush3.msra.mxu0 %v1346_v8 }
  0x65   : > { %939 = vmatprep.subr.mxu0 %v1288_v35 }
  0x66   : > { %940 = vmatpush3.msra.mxu0 %v1344_v7 }
  0x67   : > { %941 = vmatprep.subr.mxu0 %v1288_v35 }
  0x68   : > { %942 = vmatpush3.msra.mxu0 %v1342_v6 }
  0x69   : > { %943 = vmatprep.subr.mxu0 %v1288_v35 }
  0x6a   : > { %944 = vmatpush3.msra.mxu0 %v1340_v5 }
  0x6b   : > { %945 = vmatprep.subr.mxu0 %v1288_v35 }
  0x6c   : > { %946 = vmatpush3.msra.mxu0 %v1338_v4 }
  0x6d   : > { %947 = vmatprep.subr.mxu0 %v1288_v35 }
  0x6e   : > { %948 = vmatpush3.msra.mxu0 %v1336_v3 }
  0x6f   : > { %949 = vmatprep.subr.mxu0 %v1288_v35 }
  0x70   : > { %950 = vmatpush3.msra.mxu0 %v1334_v2 }
  0x71   : > { %951 = vmatprep.subr.mxu0 %v1288_v35 }
  0x72   : > { %952 = vmatpush3.msra.mxu0 %v1332_v1 }
  0x73   : > { %953 = vmatprep.subr.mxu0 %v1288_v35 }
  0x74   : > { %954 = vmatpush3.msra.mxu0 %v1330_v0 }
  0x75   : > { %993 = vmatprep.subr.mxu0 %v1288_v35 }
 0x114   : > { %v179_v36 = vpop.f32.mrf.mxu0 }
 0x115   : > { %1165 = vtanh.f32 %v179_v36 }
 0x116   : > { %v887_v37 = vpop.f32.mrf.mxu0 }
 0x122   : > { %v1166_v38 = vpop.eup %1165 }
 0x123   : > { %921 = vmatmul.mubr.f32.vlgmr.msra.gmra.mxu1 %v1166_v38 }
 0x124   : > { %959 = vmatpush3.msra.mxu1 %v1392_v31  ;;  %990 = vmatprep.mubr.msk.f32.mxu1 %vm1289_vm0, %v1288_v35 }
 0x125   : > { %960 = vmatprep.subr.mxu1 %v1288_v35 }
 0x126   : > { %961 = vmatpush3.msra.mxu1 %v1390_v30 }
 0x127   : > { %962 = vmatprep.subr.mxu1 %v1288_v35 }
 0x128   : > { %963 = vmatpush3.msra.mxu1 %v1388_v29 }
 0x129   : > { %964 = vmatprep.subr.mxu1 %v1288_v35 }
 0x12a   : > { %965 = vmatpush3.msra.mxu1 %v1386_v28 }
 0x12b   : > { %966 = vmatprep.subr.mxu1 %v1288_v35 }
 0x12c   : > { %967 = vmatpush3.msra.mxu1 %v1384_v27 }
 0x12d   : > { %968 = vmatprep.subr.mxu1 %v1288_v35 }
 0x12e   : > { %969 = vmatpush3.msra.mxu1 %v1382_v26 }
 0x12f   : > { %970 = vmatprep.subr.mxu1 %v1288_v35 }
 0x130   : > { %971 = vmatpush3.msra.mxu1 %v1380_v25 }
 0x131   : > { %972 = vmatprep.subr.mxu1 %v1288_v35 }
 0x132   : > { %973 = vmatpush3.msra.mxu1 %v1378_v24 }
 0x133   : > { %974 = vmatprep.subr.mxu1 %v1288_v35 }
 0x134   : > { %975 = vmatpush3.msra.mxu1 %v1376_v23 }
 0x135   : > { %976 = vmatprep.subr.mxu1 %v1288_v35 }
 0x136   : > { %977 = vmatpush3.msra.mxu1 %v1374_v22 }
 0x137   : > { %978 = vmatprep.subr.mxu1 %v1288_v35 }
 0x138   : > { %979 = vmatpush3.msra.mxu1 %v1372_v21 }
 0x139   : > { %980 = vmatprep.subr.mxu1 %v1288_v35 }
 0x13a   : > { %981 = vmatpush3.msra.mxu1 %v1370_v20 }
 0x13b   : > { %982 = vmatprep.subr.mxu1 %v1288_v35 }
 0x13c   : > { %983 = vmatpush3.msra.mxu1 %v1368_v19 }
 0x13d   : > { %984 = vmatprep.subr.mxu1 %v1288_v35 }
 0x13e   : > { %985 = vmatpush3.msra.mxu1 %v1366_v18 }
 0x13f   : > { %986 = vmatprep.subr.mxu1 %v1288_v35 }
 0x140   : > { %987 = vmatpush3.msra.mxu1 %v1364_v17 }
 0x141   : > { %988 = vmatprep.subr.mxu1 %v1288_v35 }
 0x142   : > { %989 = vmatpush3.msra.mxu1 %v1362_v16 }
 0x143   : > { %1028 = vmatprep.subr.mxu1 %v1288_v35 }
 0x1e3   : > { %v250_v39 = vpop.f32.mrf.mxu1 }
 0x1e4   : > { %v1554_v40 = vadd.f32 %v1397_v32, %v250_v39 }
 0x1e5   : > { %v922_v41 = vpop.f32.mrf.mxu1 }
 0x1e6   : > { %v254_v42 = vmul.f32 0.125, %v1554_v40 }
 0x1e8   : > { %v255_v43 = vadd.f32 %v1273_v33, %v254_v42 }
 0x1ea   : > { %956 = vmatmul.mubr.f32.vlgmr.msra.gmra.mxu0 %v255_v43 }
 0x1eb   : > { %994 = vmatpush3.msra.mxu0 %v1360_v15  ;;  %1025 = vmatprep.mubr.msk.f32.mxu0 %vm1289_vm0, %v1288_v35 }
 0x1ec   : > { %995 = vmatprep.subr.mxu0 %v1288_v35 }
 0x1ed   : > { %996 = vmatpush3.msra.mxu0 %v1358_v14 }
 0x1ee   : > { %997 = vmatprep.subr.mxu0 %v1288_v35 }
 0x1ef   : > { %998 = vmatpush3.msra.mxu0 %v1356_v13 }
 0x1f0   : > { %999 = vmatprep.subr.mxu0 %v1288_v35 }
 0x1f1   : > { %1000 = vmatpush3.msra.mxu0 %v1354_v12 }
 0x1f2   : > { %1001 = vmatprep.subr.mxu0 %v1288_v35 }
 0x1f3   : > { %1002 = vmatpush3.msra.mxu0 %v1352_v11 }
 0x1f4   : > { %1003 = vmatprep.subr.mxu0 %v1288_v35 }
 0x1f5   : > { %1004 = vmatpush3.msra.mxu0 %v1350_v10 }
 0x1f6   : > { %1005 = vmatprep.subr.mxu0 %v1288_v35 }
 0x1f7   : > { %1006 = vmatpush3.msra.mxu0 %v1348_v9 }
 0x1f8   : > { %1007 = vmatprep.subr.mxu0 %v1288_v35 }
 0x1f9   : > { %1008 = vmatpush3.msra.mxu0 %v1346_v8 }
 0x1fa   : > { %1009 = vmatprep.subr.mxu0 %v1288_v35 }
 0x1fb   : > { %1010 = vmatpush3.msra.mxu0 %v1344_v7 }
 0x1fc   : > { %1011 = vmatprep.subr.mxu0 %v1288_v35 }
 0x1fd   : > { %1012 = vmatpush3.msra.mxu0 %v1342_v6 }
 0x1fe   : > { %1013 = vmatprep.subr.mxu0 %v1288_v35 }
 0x1ff   : > { %1014 = vmatpush3.msra.mxu0 %v1340_v5 }
 0x200   : > { %1015 = vmatprep.subr.mxu0 %v1288_v35 }
 0x201   : > { %1016 = vmatpush3.msra.mxu0 %v1338_v4 }
 0x202   : > { %1017 = vmatprep.subr.mxu0 %v1288_v35 }
 0x203   : > { %1018 = vmatpush3.msra.mxu0 %v1336_v3 }
 0x204   : > { %1019 = vmatprep.subr.mxu0 %v1288_v35 }
 0x205   : > { %1020 = vmatpush3.msra.mxu0 %v1334_v2 }
 0x206   : > { %1021 = vmatprep.subr.mxu0 %v1288_v35 }
 0x207   : > { %1022 = vmatpush3.msra.mxu0 %v1332_v1 }
 0x208   : > { %1023 = vmatprep.subr.mxu0 %v1288_v35 }
 0x209   : > { %1024 = vmatpush3.msra.mxu0 %v1330_v0 }
 0x20a   : > { %1063 = vmatprep.subr.mxu0 %v1288_v35 }
 0x2aa   : > { %v322_v44 = vpop.f32.mrf.mxu0 }
 0x2ab   : > { %1167 = vtanh.f32 %v322_v44 }
 0x2ac   : > { %v957_v45 = vpop.f32.mrf.mxu0 }
 0x2b8   : > { %v1168_v46 = vpop.eup %1167 }
 0x2b9   : > { %991 = vmatmul.mubr.f32.vlgmr.msra.gmra.mxu1 %v1168_v46 }
 0x2ba   : > { %1029 = vmatpush3.msra.mxu1 %v1392_v31  ;;  %1060 = vmatprep.mubr.msk.f32.mxu1 %vm1289_vm0, %v1288_v35 }
 0x2bb   : > { %1030 = vmatprep.subr.mxu1 %v1288_v35 }
 0x2bc   : > { %1031 = vmatpush3.msra.mxu1 %v1390_v30 }
 0x2bd   : > { %1032 = vmatprep.subr.mxu1 %v1288_v35 }
 0x2be   : > { %1033 = vmatpush3.msra.mxu1 %v1388_v29 }
 0x2bf   : > { %1034 = vmatprep.subr.mxu1 %v1288_v35 }
 0x2c0   : > { %1035 = vmatpush3.msra.mxu1 %v1386_v28 }
 0x2c1   : > { %1036 = vmatprep.subr.mxu1 %v1288_v35 }
 0x2c2   : > { %1037 = vmatpush3.msra.mxu1 %v1384_v27 }
 0x2c3   : > { %1038 = vmatprep.subr.mxu1 %v1288_v35 }
 0x2c4   : > { %1039 = vmatpush3.msra.mxu1 %v1382_v26 }
 0x2c5   : > { %1040 = vmatprep.subr.mxu1 %v1288_v35 }
 0x2c6   : > { %1041 = vmatpush3.msra.mxu1 %v1380_v25 }
 0x2c7   : > { %1042 = vmatprep.subr.mxu1 %v1288_v35 }
 0x2c8   : > { %1043 = vmatpush3.msra.mxu1 %v1378_v24 }
 0x2c9   : > { %1044 = vmatprep.subr.mxu1 %v1288_v35 }
 0x2ca   : > { %1045 = vmatpush3.msra.mxu1 %v1376_v23 }
 0x2cb   : > { %1046 = vmatprep.subr.mxu1 %v1288_v35 }
 0x2cc   : > { %1047 = vmatpush3.msra.mxu1 %v1374_v22 }
 0x2cd   : > { %1048 = vmatprep.subr.mxu1 %v1288_v35 }
 0x2ce   : > { %1049 = vmatpush3.msra.mxu1 %v1372_v21 }
 0x2cf   : > { %1050 = vmatprep.subr.mxu1 %v1288_v35 }
 0x2d0   : > { %1051 = vmatpush3.msra.mxu1 %v1370_v20 }
 0x2d1   : > { %1052 = vmatprep.subr.mxu1 %v1288_v35 }
 0x2d2   : > { %1053 = vmatpush3.msra.mxu1 %v1368_v19 }
 0x2d3   : > { %1054 = vmatprep.subr.mxu1 %v1288_v35 }
 0x2d4   : > { %1055 = vmatpush3.msra.mxu1 %v1366_v18 }
 0x2d5   : > { %1056 = vmatprep.subr.mxu1 %v1288_v35 }
 0x2d6   : > { %1057 = vmatpush3.msra.mxu1 %v1364_v17 }
 0x2d7   : > { %1058 = vmatprep.subr.mxu1 %v1288_v35 }
 0x2d8   : > { %1059 = vmatpush3.msra.mxu1 %v1362_v16 }
 0x2d9   : > { %1098 = vmatprep.subr.mxu1 %v1288_v35 }
 0x379   : > { %v393_v47 = vpop.f32.mrf.mxu1 }
 0x37a   : > { %v1627_v48 = vadd.f32 %v1397_v32, %v393_v47 }
 0x37b   : > { %v992_v49 = vpop.f32.mrf.mxu1 }
 0x37c   : > { %v399_v50 = vmul.f32 0.125, %v1627_v48  ;;  %v397_v55 = vmul.f32 2.0, %v1627_v48 }
 0x37e   : > { %v400_v51 = vadd.f32 %v1273_v33, %v399_v50  ;;  %v398_v59 = vadd.f32 %v397_v55, %v1554_v40 }
 0x380   : > { %1026 = vmatmul.mubr.f32.vlgmr.msra.gmra.mxu0 %v400_v51 }
 0x381   : > { %1064 = vmatpush3.msra.mxu0 %v1360_v15  ;;  %1095 = vmatprep.mubr.msk.f32.mxu0 %vm1289_vm0, %v1288_v35 }
 0x382   : > { %1065 = vmatprep.subr.mxu0 %v1288_v35 }
 0x383   : > { %1066 = vmatpush3.msra.mxu0 %v1358_v14 }
 0x384   : > { %1067 = vmatprep.subr.mxu0 %v1288_v35 }
 0x385   : > { %1068 = vmatpush3.msra.mxu0 %v1356_v13 }
 0x386   : > { %1069 = vmatprep.subr.mxu0 %v1288_v35 }
 0x387   : > { %1070 = vmatpush3.msra.mxu0 %v1354_v12 }
 0x388   : > { %1071 = vmatprep.subr.mxu0 %v1288_v35 }
 0x389   : > { %1072 = vmatpush3.msra.mxu0 %v1352_v11 }
 0x38a   : > { %1073 = vmatprep.subr.mxu0 %v1288_v35 }
 0x38b   : > { %1074 = vmatpush3.msra.mxu0 %v1350_v10 }
 0x38c   : > { %1075 = vmatprep.subr.mxu0 %v1288_v35 }
 0x38d   : > { %1076 = vmatpush3.msra.mxu0 %v1348_v9 }
 0x38e   : > { %1077 = vmatprep.subr.mxu0 %v1288_v35 }
 0x38f   : > { %1078 = vmatpush3.msra.mxu0 %v1346_v8 }
 0x390   : > { %1079 = vmatprep.subr.mxu0 %v1288_v35 }
 0x391   : > { %1080 = vmatpush3.msra.mxu0 %v1344_v7 }
 0x392   : > { %1081 = vmatprep.subr.mxu0 %v1288_v35 }
 0x393   : > { %1082 = vmatpush3.msra.mxu0 %v1342_v6 }
 0x394   : > { %1083 = vmatprep.subr.mxu0 %v1288_v35 }
 0x395   : > { %1084 = vmatpush3.msra.mxu0 %v1340_v5 }
 0x396   : > { %1085 = vmatprep.subr.mxu0 %v1288_v35 }
 0x397   : > { %1086 = vmatpush3.msra.mxu0 %v1338_v4 }
 0x398   : > { %1087 = vmatprep.subr.mxu0 %v1288_v35 }
 0x399   : > { %1088 = vmatpush3.msra.mxu0 %v1336_v3 }
 0x39a   : > { %1089 = vmatprep.subr.mxu0 %v1288_v35 }
 0x39b   : > { %1090 = vmatpush3.msra.mxu0 %v1334_v2 }
 0x39c   : > { %1091 = vmatprep.subr.mxu0 %v1288_v35 }
 0x39d   : > { %1092 = vmatpush3.msra.mxu0 %v1332_v1 }
 0x39e   : > { %1093 = vmatprep.subr.mxu0 %v1288_v35 }
 0x39f   : > { %1094 = vmatpush3.msra.mxu0 %v1330_v0 }
 0x440   : > { %v467_v52 = vpop.f32.mrf.mxu0 }
 0x441   : > { %1169 = vtanh.f32 %v467_v52 }
 0x442   : > { %v1027_v53 = vpop.f32.mrf.mxu0 }
 0x44e   : > { %v1170_v54 = vpop.eup %1169 }
 0x44f   : > { %1061 = vmatmul.mubr.f32.vlgmr.msra.gmra.mxu1 %v1170_v54 }
 0x450   : > { %1099 = vmatpush3.msra.mxu1 %v1392_v31  ;;  %1130 = vmatprep.mubr.msk.f32.mxu1 %vm1289_vm0, %v1288_v35 }
 0x451   : > { %1100 = vmatprep.subr.mxu1 %v1288_v35 }
 0x452   : > { %1101 = vmatpush3.msra.mxu1 %v1390_v30 }
 0x453   : > { %1102 = vmatprep.subr.mxu1 %v1288_v35 }
 0x454   : > { %1103 = vmatpush3.msra.mxu1 %v1388_v29 }
 0x455   : > { %1104 = vmatprep.subr.mxu1 %v1288_v35 }
 0x456   : > { %1105 = vmatpush3.msra.mxu1 %v1386_v28 }
 0x457   : > { %1106 = vmatprep.subr.mxu1 %v1288_v35 }
 0x458   : > { %1107 = vmatpush3.msra.mxu1 %v1384_v27 }
 0x459   : > { %1108 = vmatprep.subr.mxu1 %v1288_v35 }
 0x45a   : > { %1109 = vmatpush3.msra.mxu1 %v1382_v26 }
 0x45b   : > { %1110 = vmatprep.subr.mxu1 %v1288_v35 }
 0x45c   : > { %1111 = vmatpush3.msra.mxu1 %v1380_v25 }
 0x45d   : > { %1112 = vmatprep.subr.mxu1 %v1288_v35 }
 0x45e   : > { %1113 = vmatpush3.msra.mxu1 %v1378_v24 }
 0x45f   : > { %1114 = vmatprep.subr.mxu1 %v1288_v35 }
 0x460   : > { %1115 = vmatpush3.msra.mxu1 %v1376_v23 }
 0x461   : > { %1116 = vmatprep.subr.mxu1 %v1288_v35 }
 0x462   : > { %1117 = vmatpush3.msra.mxu1 %v1374_v22 }
 0x463   : > { %1118 = vmatprep.subr.mxu1 %v1288_v35 }
 0x464   : > { %1119 = vmatpush3.msra.mxu1 %v1372_v21 }
 0x465   : > { %1120 = vmatprep.subr.mxu1 %v1288_v35 }
 0x466   : > { %1121 = vmatpush3.msra.mxu1 %v1370_v20 }
 0x467   : > { %1122 = vmatprep.subr.mxu1 %v1288_v35 }
 0x468   : > { %1123 = vmatpush3.msra.mxu1 %v1368_v19 }
 0x469   : > { %1124 = vmatprep.subr.mxu1 %v1288_v35 }
 0x46a   : > { %1125 = vmatpush3.msra.mxu1 %v1366_v18 }
 0x46b   : > { %1126 = vmatprep.subr.mxu1 %v1288_v35 }
 0x46c   : > { %1127 = vmatpush3.msra.mxu1 %v1364_v17 }
 0x46d   : > { %1128 = vmatprep.subr.mxu1 %v1288_v35 }
 0x46e   : > { %1129 = vmatpush3.msra.mxu1 %v1362_v16 }
 0x50f   : > { %v538_v56 = vpop.f32.mrf.mxu1 }
 0x510   : > { %v539_v57 = vadd.f32 %v1397_v32, %v538_v56 }
 0x511   : > { %v1062_v58 = vpop.f32.mrf.mxu1 }
 0x512   : > { %v542_v60 = vmul.f32 2.0, %v539_v57  ;;  %v544_v61 = vmul.f32 0.25, %v539_v57 }
 0x514   : > { %v545_v62 = vadd.f32 %v1273_v33, %v544_v61  ;;  %v543_v63 = vadd.f32 %v542_v60, %v398_v59 }
 0x516   : > { %1096 = vmatmul.mubr.f32.vlgmr.msra.gmra.mxu0 %v545_v62 }
 0x5d6   : > { %v612_v34 = vpop.f32.mrf.mxu0 }
 0x5d7   : > { %1171 = vtanh.f32 %v612_v34 }
 0x5d8   : > { %v1097_v36 = vpop.f32.mrf.mxu0 }
 0x5e4   : > { %v1172_v35 = vpop.eup %1171 }
 0x5e5   : > { %1131 = vmatmul.mubr.f32.vlgmr.msra.gmra.mxu1 %v1172_v35 }
 0x6a5   : > { %v683_v37 = vpop.f32.mrf.mxu1 }
 0x6a6   : > { %v684_v38 = vadd.f32 %v1397_v32, %v683_v37 }
 0x6a7   : > { %v1132_v39 = vpop.f32.mrf.mxu1 }
 0x6a8   : > { %v687_v41 = vadd.f32 %v684_v38, %v543_v63 }
 0x6aa   : > { %v688_v42 = vmul.f32 0.041666668, %v687_v41  ;;  %111 = sbr.rel (!%p108_p2) target bundleno = 51 (0x33), region = 59 }
 0x6ac   : > { %v689_v43 = vadd.f32 %v1273_v33, %v688_v42  }
 0x6ae   : > { %v1724_v33 = vmov %v689_v43  ;;  %v1725_v34 = vmov (%p108_p2), %v689_v43 }
 0x6af PF:  { %690 = vst [vmem:[#allocation10] sm:$0xff] %v1281_v34  ;;  %s1290_s13 = smov [#allocation10]   ;;  %v1281_v34 = vphi %v1723_v34, %v1725_v34  }
 0x6b0   :  { %s697_s14 = sshll.u32 %s1290_s13, 4  ;;  %s698_s14 = int_to_ptr.vmem [resolvable:$true] %s697_s14 }
 0x6b1   :  { %s1233_s15 = scalar_lea.vmem %s698_s14, 128  ;;  %p1238_p4 = scmp.lt.s32.totalorder %s698_s14, %s698_s14 }
 0x6b2   :  { %p1234_p3 = scmp.ne.s32.totalorder %s698_s14, %s1233_s15  ;;  %p1239_p5 = scmp.lt.s32.totalorder %s1233_s15, %s1233_s15 }
 0x6b4   :  { %p1240_p6 = por %p1239_p5, %p1238_p4 }
 0x6b6   :  { %p1241_p7 = pnand %p1240_p6, %p1234_p3 }
 0x6b8   :  { %1244 = shalt.err (!%p1241_p7)
}
 0x6b9   :  { %700 = dma.vmem_to_hbm [thread:$0]  %s698_s14, 128, %s1722_s5, [#allocation6]  }
 0x6ba   :  { %1269 = dma.done.wait [#allocation6], 128  }
 0x6bb   :  { %1270 = vsyncadd [#allocation6], 4294967168 }
 0x6bc   :  { %704 = vsyncpa [#allocation5], 1 }
 0x6bd   :  { %705 = vsyncpa [#allocation8], 1 }
 0x6be   :  { %706 = vsyncpa [#allocation6], 1 }

</bundles_post_ra>
